<compile_context>
chip_gen: v7x
topology: tpu7x:2x2x1
jax: 0.10.0
libtpu: 0.0.40
codegen_flags: <defaults>
</compile_context>

<pallas_src>
import functools

import numpy as np

import jax
import jax.numpy as jnp
from jax.experimental import pallas as pl
from jax.experimental.pallas import tpu as pltpu


# -----------------------------------------------------------------------------
# Kernels
# -----------------------------------------------------------------------------
def _fused_kernel(sel_ref, x_ref, o_ref, *, pad, c):
    """One selector matmul does both the even-row and even-column picks.

    sel_ref: (H*W, H2*W2) 0/1 selector (VMEM-resident, constant index_map).
    x_ref:   (b, C, H*W)            lane-dense input block.
    o_ref:   (b, C + 2*pad, H2*W2)  lane-dense output block.
    """
    b = x_ref.shape[0]
    hw = x_ref.shape[2]
    kout = sel_ref.shape[1]

    # Leading-dim collapse: lane dim (H*W) unchanged, no lane movement.
    x2 = x_ref[...].reshape(b * c, hw)
    # Exactly one nonzero (==1) per selector column -> each output element is a
    # copy of one input element.  precision=HIGHEST keeps f32 operands exact.
    y = jnp.dot(x2, sel_ref[...],
                preferred_element_type=jnp.float32,
                precision=jax.lax.Precision.HIGHEST)
    # Leading-dim split back to (b, c, H2*W2) — no lane movement — and store.
    y = y.reshape(b, c, kout).astype(o_ref.dtype)

    if pad > 0:
        zpad = jnp.zeros((b, pad, kout), o_ref.dtype)
        o_ref[:, :pad, :] = zpad
        o_ref[:, pad + c:, :] = zpad
    o_ref[:, pad:pad + c, :] = y


def _twostage_kernel(sel_ref, x_ref, o_ref, *, pad, h2, w2):
    """v5e/f32 fallback: K=W column-selector matmul + even-row lane concat."""
    b, c, h, w = x_ref.shape
    kout = h2 * w2

    t = jnp.dot(x_ref[...].reshape(b * c * h, w), sel_ref[...],
                preferred_element_type=jnp.float32,
                precision=jax.lax.Precision.HIGHEST)
    t = t.reshape(b, c, h, w2)
    y = jnp.concatenate([t[:, :, 2 * i, :] for i in range(h2)], axis=-1)
    y = y.astype(o_ref.dtype)

    if pad > 0:
        zpad = jnp.zeros((b, pad, kout), o_ref.dtype)
        o_ref[:, :pad, :] = zpad
        o_ref[:, pad + c:, :] = zpad
    o_ref[:, pad:pad + c, :] = y


# -----------------------------------------------------------------------------
# Host-side helpers
# -----------------------------------------------------------------------------
def _fused_selector(h, w, h2, w2, dtype):
    """sel[hw, k] = 1 iff flat input index hw == (2*(k//w2))*w + 2*(k%w2)."""
    k = np.arange(h2 * w2)
    src = (2 * (k // w2)) * w + 2 * (k % w2)
    sel = np.zeros((h * w, h2 * w2), dtype=np.float32)
    sel[src, k] = 1.0
    return jnp.asarray(sel, dtype=dtype)


def _col_selector(w, w2, dtype):
    """sel[w_in, k] = 1 iff w_in == 2*k."""
    sel = np.zeros((w, w2), dtype=np.float32)
    sel[2 * np.arange(w2), np.arange(w2)] = 1.0
    return jnp.asarray(sel, dtype=dtype)


def _device_kind():
    try:
        return jax.devices()[0].device_kind.lower()
    except Exception:
        return ""


def _cdiv(a, b):
    return -(-a // b)


def _pick_batch_block(n, bytes_per_image, target_bytes, *, two_core_chip):
    """Largest batch block moving <= target_bytes of HBM traffic per grid step.

    On two-TensorCore chips keep >= 2 grid steps when n >= 2 and prefer an even
    step count so both cores get balanced work.
    """
    b = max(1, min(n, target_bytes // max(bytes_per_image, 1)))
    if two_core_chip and n >= 2:
        b = min(b, _cdiv(n, 2))
        steps = _cdiv(n, b)
        tries = 0
        while steps > 1 and steps % 2 == 1 and b > 1 and tries < 4:
            b = max(1, _cdiv(n, steps + 1))
            steps = _cdiv(n, b)
            tries += 1
    return int(b)


# -----------------------------------------------------------------------------
# Public wrapper
# -----------------------------------------------------------------------------
def lambda_layer(x, planes, *, step_bytes=None):
    """Option-'A' ResNet shortcut: x[:, :, ::2, ::2] zero-padded by planes//4
    channels on each side.  NCHW layout, same semantics as the PyTorch lambda."""
    n, c, h, w = x.shape
    assert h % 2 == 0 and w % 2 == 0, "H and W must be even for ::2 subsampling"
    pad = planes // 4
    h2, w2 = h // 2, w // 2
    c_out = c + 2 * pad
    kout = h2 * w2

    kind = _device_kind()
    is_v5e = ("v5" in kind) and ("lite" in kind or "v5e" in kind)
    is_v7 = "v7" in kind

    # v5e gate: exact-f32 K=H*W selector matmul can make v5e MXU-bound, so keep
    # the cheap two-stage pick there for f32 activations.
    use_fused = not (is_v5e and x.dtype == jnp.float32)

    bytes_per_image = (c * h * w + c_out * kout) * x.dtype.itemsize
    if step_bytes is None:
        step_bytes = (2 << 20) if is_v5e else (4 << 20)
    b_blk = _pick_batch_block(n, bytes_per_image, step_bytes, two_core_chip=is_v7)
    grid = (pl.cdiv(n, b_blk),)  # remainder block is masked on writeback

    if use_fused:
        sel = _fused_selector(h, w, h2, w2, x.dtype)
        kernel = functools.partial(_fused_kernel, pad=pad, c=c)
        x_in = x.reshape(n, c, h * w)  # free, contiguous -> lane-dense blocks
        in_specs = [
            pl.BlockSpec((h * w, kout), lambda i: (0, 0)),        # VMEM-resident
            pl.BlockSpec((b_blk, c, h * w), lambda i: (i, 0, 0)),
        ]
    else:
        sel = _col_selector(w, w2, x.dtype)
        kernel = functools.partial(_twostage_kernel, pad=pad, h2=h2, w2=w2)
        x_in = x
        in_specs = [
            pl.BlockSpec((w, w2), lambda i: (0, 0)),               # VMEM-resident
            pl.BlockSpec((b_blk, c, h, w), lambda i: (i, 0, 0, 0)),
        ]

    out_flat = pl.pallas_call(
        kernel,
        out_shape=jax.ShapeDtypeStruct((n, c_out, kout), x.dtype),
        grid=grid,
        in_specs=in_specs,
        out_specs=pl.BlockSpec((b_blk, c_out, kout), lambda i: (i, 0, 0)),
        compiler_params=pltpu.CompilerParams(
            dimension_semantics=("parallel",)),
    )(sel, x_in)

    # Contiguity-preserving (free) reshape back to NCHW semantics.
    return out_flat.reshape(n, c_out, h2, w2)


# -----------------------------------------------------------------------------
# Self-test
# -----------------------------------------------------------------------------
if __name__ == "__main__":
    k1, k2 = jax.random.split(jax.random.PRNGKey(0))

    # Scaled-down version of the resnet_contrastive option-'A' shortcut
    # (16 -> 32 channels at 32x32 in the real net): 8 -> 16 channels at 16x16.
    N, C, H, W = 2, 8, 16, 16
    planes = 2 * C
    pad = planes // 4
    x = jax.random.normal(k1, (N, C, H, W), dtype=jnp.float32)

    out = jax.block_until_ready(lambda_layer(x, planes))
    ref = jnp.pad(x[:, :, ::2, ::2], ((0, 0), (pad, pad), (0, 0), (0, 0)))
    assert out.shape == ref.shape, (out.shape, ref.shape)
    assert jnp.allclose(out, ref, atol=1e-6), "mismatch vs reference"

    # Non-divisible batch: force a multi-step grid with a masked remainder
    # block to exercise the pl.cdiv path.
    x2 = jax.random.normal(k2, (3, C, H, W), dtype=jnp.float32)
    bytes_per_image = (C * H * W + (C + 2 * pad) * (H // 2) * (W // 2)) * 4
    out2 = jax.block_until_ready(
        lambda_layer(x2, planes, step_bytes=2 * bytes_per_image))
    ref2 = jnp.pad(x2[:, :, ::2, ::2], ((0, 0), (pad, pad), (0, 0), (0, 0)))
    assert out2.shape == ref2.shape, (out2.shape, ref2.shape)
    assert jnp.allclose(out2, ref2, atol=1e-6), "mismatch vs reference (remainder)"

    print("KERNEL_OK")
</pallas_src>

<mosaic_0001>
module attributes {stable_mosaic.version = 11 : i64} {
  func.func @_fused_kernel(%arg0: i32, %arg1: memref<256x64xf32, #tpu.memory_space<vmem>>, %arg2: memref<2x8x256xf32, #tpu.memory_space<vmem>>, %arg3: memref<2x16x64xf32, #tpu.memory_space<vmem>>) attributes {dimension_semantics = [#tpu.dimension_semantics<parallel>], iteration_bounds = array<i64: 1>, scalar_prefetch = 0 : i64, scratch_operands = 0 : i64, tpu.core_type = #tpu.core_type<tc>, window_params = [{pipeline_mode = #tpu.pipeline_mode<synchronous>, transform_indices = @transform_0, window_bounds = array<i64: 256, 64>}, {transform_indices = @transform_1, window_bounds = array<i64: 2, 8, 256>}, {transform_indices = @transform_2, window_bounds = array<i64: 2, 16, 64>}]} {
    %c0 = arith.constant 0 : index
    %c0_0 = arith.constant 0 : index
    %c0_1 = arith.constant 0 : index
    %0 = vector.load %arg2[%c0, %c0_0, %c0_1] : memref<2x8x256xf32, #tpu.memory_space<vmem>>, vector<2x8x256xf32>
    %1 = vector.shape_cast %0 : vector<2x8x256xf32> to vector<16x256xf32>
    %c0_2 = arith.constant 0 : index
    %c0_3 = arith.constant 0 : index
    %2 = vector.load %arg1[%c0_2, %c0_3] : memref<256x64xf32, #tpu.memory_space<vmem>>, vector<256x64xf32>
    %cst = arith.constant dense<0.000000e+00> : vector<16x64xf32>
    %3 = tpu.matmul %1, %2, %cst {dimension_numbers = #tpu.dot_dimension_numbers<[1], [0], [0], [1], [0, 0, 1, 1], [], []>, precision = #tpu.contract_precision<fp32>} : vector<16x256xf32>, vector<256x64xf32>, vector<16x64xf32> -> vector<16x64xf32>
    %4 = vector.shape_cast %3 : vector<16x64xf32> to vector<2x8x64xf32>
    %cst_4 = arith.constant 0.000000e+00 : f32
    %5 = vector.broadcast %cst_4 : f32 to vector<2x4x64xf32>
    %c0_5 = arith.constant 0 : index
    %c0_6 = arith.constant 0 : index
    %c0_7 = arith.constant 0 : index
    %6 = vector.load %arg3[%c0_5, %c0_6, %c0_7] : memref<2x16x64xf32, #tpu.memory_space<vmem>>, vector<2x4x64xf32>
    tpu.vector_store %arg3[%c0_5, %c0_6, %c0_7], %5 {strides = array<i32>} : memref<2x16x64xf32, #tpu.memory_space<vmem>>, vector<2x4x64xf32>,
    %c0_8 = arith.constant 0 : index
    %c12 = arith.constant 12 : index
    %c0_9 = arith.constant 0 : index
    %7 = vector.load %arg3[%c0_8, %c12, %c0_9] : memref<2x16x64xf32, #tpu.memory_space<vmem>>, vector<2x4x64xf32>
    tpu.vector_store %arg3[%c0_8, %c12, %c0_9], %5 {strides = array<i32>} : memref<2x16x64xf32, #tpu.memory_space<vmem>>, vector<2x4x64xf32>,
    %c0_10 = arith.constant 0 : index
    %c4 = arith.constant 4 : index
    %c0_11 = arith.constant 0 : index
    %8 = vector.load %arg3[%c0_10, %c4, %c0_11] : memref<2x16x64xf32, #tpu.memory_space<vmem>>, vector<2x8x64xf32>
    tpu.vector_store %arg3[%c0_10, %c4, %c0_11], %4 {strides = array<i32>} : memref<2x16x64xf32, #tpu.memory_space<vmem>>, vector<2x8x64xf32>,
    return
  }
  func.func @transform_0(%arg0: i32) -> (i32, i32) {
    %c0_i32 = arith.constant 0 : i32
    %c0_i32_0 = arith.constant 0 : i32
    %c0_i32_1 = arith.constant 0 : i32
    return %c0_i32, %c0_i32_0 : i32, i32
  }
  func.func @transform_1(%arg0: i32) -> (i32, i32, i32) {
    %c0_i32 = arith.constant 0 : i32
    %c0_i32_0 = arith.constant 0 : i32
    %c0_i32_1 = arith.constant 0 : i32
    return %arg0, %c0_i32, %c0_i32_0 : i32, i32, i32
  }
  func.func @transform_2(%arg0: i32) -> (i32, i32, i32) {
    %c0_i32 = arith.constant 0 : i32
    %c0_i32_0 = arith.constant 0 : i32
    %c0_i32_1 = arith.constant 0 : i32
    return %arg0, %c0_i32, %c0_i32_0 : i32, i32, i32
  }
}

</mosaic_0001>

<bundles_post_ra>
// kernel: tpu_custom_call.1
= control target key start
LH: loop header
LB: loop body
LE: loop exit
PB: predicated region body
PF: predicated region fallthrough
CT: control target
= control target key end

     0   :  { %s2017_s0 = inlined_call_operand.vmem [shape: f32[256,64], index: 0, kind: input, shape index: {}]   ;;  %s2018_s1 = inlined_call_operand.vmem [shape: f32[2,8,256], index: 1, kind: input, shape index: {}]   ;;  %s2019_s2 = inlined_call_operand.hbm [shape: f32[2,16,64], index: 2, kind: output, shape index: {}]  }
   0x1   :  { %v32_v0 = vld [vmem:[%s2017_s0 + $0x80] sm:$0xff]  ;;  %v33_v1 = vld [vmem:[%s2017_s0 + $0x88] sm:$0xff]  ;;  %v34_v7 = vld [vmem:[%s2017_s0 + $0x90] sm:$0xff] }
   0x2   :  { %v16_v2 = vld [vmem:[%s2017_s0] sm:$0xff]  ;;  %v97_v3 = vand.u32 4294901760, %v32_v0  ;;  %v100_v4 = vand.u32 4294901760, %v33_v1  ;;  %v17_v5 = vld [vmem:[%s2017_s0 + $0x8] sm:$0xff]  ;;  %v35_v8 = vld [vmem:[%s2017_s0 + $0x98] sm:$0xff]  ;;  %v103_v10 = vand.u32 4294901760, %v34_v7 }
   0x3   :  { %v49_v6 = vand.u32 4294901760, %v16_v2  ;;  %v52_v9 = vand.u32 4294901760, %v17_v5  ;;  %v106_v11 = vand.u32 4294901760, %v35_v8  ;;  %v18_v12 = vld [vmem:[%s2017_s0 + $0x10] sm:$0xff]  ;;  %v19_v13 = vld [vmem:[%s2017_s0 + $0x18] sm:$0xff]  ;;  %v36_v18 = vld [vmem:[%s2017_s0 + $0xa0] sm:$0xff] }
   0x4   :  { %v1481_v14 = vpack.c.bf16 %v100_v4, %v97_v3  ;;  %v55_v16 = vand.u32 4294901760, %v18_v12  ;;  %v58_v17 = vand.u32 4294901760, %v19_v13  ;;  %v37_v19 = vld [vmem:[%s2017_s0 + $0xa8] sm:$0xff]  ;;  %v20_v23 = vld [vmem:[%s2017_s0 + $0x20] sm:$0xff]  ;;  %v1504_v25 = vsub.f32 %v34_v7, %v103_v10  ;;  %v38_v37 = vld [vmem:[%s2017_s0 + $0xb0] sm:$0xff] }
   0x5   :  { %v1483_v15 = vsub.f32 %v16_v2, %v49_v6  ;;  %v1491_v20 = vpack.c.bf16 %v52_v9, %v49_v6  ;;  %v1493_v21 = vsub.f32 %v17_v5, %v52_v9  ;;  %v1495_v22 = vpack.c.bf16 %v106_v11, %v103_v10  ;;  %v21_v24 = vld [vmem:[%s2017_s0 + $0x28] sm:$0xff]  ;;  %v39_v42 = vld [vmem:[%s2017_s0 + $0xb8] sm:$0xff]  ;;  %v22_v55 = vld [vmem:[%s2017_s0 + $0x30] sm:$0xff] }
   0x6   :  { %1219 = vmatprep.subr.bf16.mxu0 %v1481_v14  ;;  %v1506_v26 = vsub.f32 %v35_v8, %v106_v11  ;;  %v1508_v27 = vpack.c.bf16 %v58_v17, %v55_v16  ;;  %v1510_v28 = vsub.f32 %v18_v12, %v55_v16  ;;  %v109_v29 = vand.u32 4294901760, %v36_v18  ;;  %v23_v56 = vld [vmem:[%s2017_s0 + $0x38] sm:$0xff] }
   0x7   :  { %1221 = vmatpush3.bf16.msra.mxu0 %v1491_v20  ;;  %v112_v30 = vand.u32 4294901760, %v37_v19  ;;  %v1513_v31 = vsub.f32 %v32_v0, %v97_v3  ;;  %v1515_v32 = vsub.f32 %v33_v1, %v100_v4  ;;  %v61_v33 = vand.u32 4294901760, %v20_v23 }
   0x8   :  { %1223 = vmatprep.subr.bf16.mxu0 %v1495_v22  ;;  %v64_v34 = vand.u32 4294901760, %v21_v24  ;;  %v2036_v35 = vand.u32 4294901760, %v1483_v15  ;;  %v2035_v36 = vand.u32 4294901760, %v1493_v21  ;;  %v1523_v38 = vsub.f32 %v19_v13, %v58_v17 }
   0x9   :  { %v1525_v39 = vpack.c.bf16 %v112_v30, %v109_v29  ;;  %v1527_v40 = vsub.f32 %v36_v18, %v109_v29  ;;  %v2041_v41 = vand.u32 4294901760, %v1513_v31  ;;  %v1533_v43 = vsub.f32 %v37_v19, %v112_v30 }
   0xa   :  { %v2038_v44 = vand.u32 4294901760, %v1515_v32  ;;  %v1536_v45 = vpack.c.bf16 %v64_v34, %v61_v33  ;;  %v1538_v46 = vsub.f32 %v20_v23, %v61_v33  ;;  %v179_v48 = vsub.f32 %v1483_v15, %v2036_v35 }
   0xb   :  { %1225 = vmatpush3.bf16.msra.mxu0 %v1508_v27  ;;  %v291_v47 = vsub.f32 %v1513_v31, %v2041_v41  ;;  %v186_v49 = vsub.f32 %v1493_v21, %v2035_v36  ;;  %v115_v50 = vand.u32 4294901760, %v38_v37  ;;  %v118_v52 = vand.u32 4294901760, %v39_v42 }
   0xc   :  { %1227 = vmatprep.subr.bf16.mxu0 %v1525_v39  ;;  %v298_v51 = vsub.f32 %v1515_v32, %v2038_v44  ;;  %v2033_v53 = vand.u32 4294901760, %v1504_v25  ;;  %v2032_v54 = vand.u32 4294901760, %v1506_v26  ;;  %v1562_v58 = vsub.f32 %v21_v24, %v64_v34 }
   0xd   :  { %v292_v57 = vand.u32 4294901760, %v291_v47  ;;  %v180_v59 = vand.u32 4294901760, %v179_v48  ;;  %v187_v60 = vand.u32 4294901760, %v186_v49 }
   0xe   :  { %7 = vsyncpa [#allocation3], 0  ;;  %v299_v61 = vand.u32 4294901760, %v298_v51  ;;  %v1564_v62 = vpack.c.bf16 %v118_v52, %v115_v50  ;;  %v1566_v63 = vsub.f32 %v38_v37, %v115_v50  ;;  %v305_v0 = vsub.f32 %v1504_v25, %v2033_v53  ;;  %v40_v5 = vld [vmem:[%s2017_s0 + $0xc0] sm:$0xff]  ;;  %v41_v6 = vld [vmem:[%s2017_s0 + $0xc8] sm:$0xff] }
   0xf   :  { %1229 = vmatpush3.bf16.msra.mxu0 %v1536_v45  ;;  %v1252_v1 = vpack.c.bf16 %v187_v60, %v180_v59  ;;  %v312_v2 = vsub.f32 %v1506_v26, %v2032_v54  ;;  %v67_v3 = vand.u32 4294901760, %v22_v55  ;;  %v70_v4 = vand.u32 4294901760, %v23_v56  ;;  %v24_v11 = vld [vmem:[%s2017_s0 + $0x40] sm:$0xff]  ;;  %v25_v29 = vld [vmem:[%s2017_s0 + $0x48] sm:$0xff] }
  0x10   :  { %v1250_v7 = vpack.c.bf16 %v299_v61, %v292_v57  ;;  %1231 = vmatprep.subr.bf16.mxu0 %v1564_v62  ;;  %v306_v8 = vand.u32 4294901760, %v305_v0  ;;  %v2031_v9 = vand.u32 4294901760, %v1510_v28  ;;  %v2028_v10 = vand.u32 4294901760, %v1523_v38  ;;  %v43_v57 = vld [vmem:[%s2017_s0 + $0xd8] sm:$0xff] }
  0x11   :  { %v1587_v12 = vsub.f32 %v39_v42, %v118_v52  ;;  %v313_v13 = vand.u32 4294901760, %v312_v2  ;;  %v1589_v16 = vpack.c.bf16 %v70_v4, %v67_v3  ;;  %v1591_v17 = vsub.f32 %v22_v55, %v67_v3 }
  0x12   :  { %1251 = vmatprep.subr.bf16.mxu1 %v1250_v7  ;;  %v193_v18 = vsub.f32 %v1510_v28, %v2031_v9  ;;  %v200_v19 = vsub.f32 %v1523_v38, %v2028_v10  ;;  %v121_v23 = vand.u32 4294901760, %v40_v5  ;;  %v124_v24 = vand.u32 4294901760, %v41_v6 }
  0x13   :  { %1253 = vmatpush3.bf16.msra.mxu1 %v1252_v1  ;;  %v1254_v30 = vpack.c.bf16 %v313_v13, %v306_v8  ;;  %1233 = vmatpush3.bf16.msra.mxu0 %v1589_v16  ;;  %v2026_v33 = vand.u32 4294901760, %v1527_v40  ;;  %v2025_v34 = vand.u32 4294901760, %v1533_v43  ;;  %v73_v37 = vand.u32 4294901760, %v24_v11  ;;  %v26_v1 = vld [vmem:[%s2017_s0 + $0x50] sm:$0xff] }
  0x14   :  { %v1605_v42 = vsub.f32 %v23_v56, %v70_v4  ;;  %v194_v47 = vand.u32 4294901760, %v193_v18  ;;  %v201_v48 = vand.u32 4294901760, %v200_v19  ;;  %v1607_v49 = vpack.c.bf16 %v124_v24, %v121_v23  ;;  %v42_v56 = vld [vmem:[%s2017_s0 + $0xd0] sm:$0xff]  ;;  %v27_v18 = vld [vmem:[%s2017_s0 + $0x58] sm:$0xff] }
  0x15   :  { %1255 = vmatprep.subr.bf16.mxu1 %v1254_v30  ;;  %v1609_v50 = vsub.f32 %v40_v5, %v121_v23  ;;  %v319_v51 = vsub.f32 %v1527_v40, %v2026_v33  ;;  %v326_v52 = vsub.f32 %v1533_v43, %v2025_v34  ;;  %v76_v55 = vand.u32 4294901760, %v25_v29 }
  0x16   :  { %v1256_v59 = vpack.c.bf16 %v201_v48, %v194_v47  ;;  %1235 = vmatprep.subr.bf16.mxu0 %v1607_v49  ;;  %v1624_v60 = vsub.f32 %v41_v6, %v124_v24  ;;  %v2023_v61 = vand.u32 4294901760, %v1538_v46  ;;  %v2022_v0 = vand.u32 4294901760, %v1562_v58 }
  0x17   :  { %v320_v2 = vand.u32 4294901760, %v319_v51  ;;  %v327_v3 = vand.u32 4294901760, %v326_v52  ;;  %v1631_v4 = vpack.c.bf16 %v76_v55, %v73_v37  ;;  %v1633_v5 = vsub.f32 %v24_v11, %v73_v37 }
  0x18   :  { %1257 = vmatpush3.bf16.msra.mxu1 %v1256_v59  ;;  %v207_v6 = vsub.f32 %v1538_v46, %v2023_v61  ;;  %v214_v7 = vsub.f32 %v1562_v58, %v2022_v0  ;;  %v127_v8 = vand.u32 4294901760, %v42_v56  ;;  %v130_v13 = vand.u32 4294901760, %v43_v57 }
  0x19   :  { %v1258_v19 = vpack.c.bf16 %v327_v3, %v320_v2  ;;  %1237 = vmatpush3.bf16.msra.mxu0 %v1631_v4  ;;  %v2021_v11 = vand.u32 4294901760, %v1566_v63  ;;  %v2020_v23 = vand.u32 4294901760, %v1587_v12  ;;  %v79_v24 = vand.u32 4294901760, %v26_v1 }
  0x1a   :  { %v1647_v30 = vsub.f32 %v25_v29, %v76_v55  ;;  %v208_v37 = vand.u32 4294901760, %v207_v6  ;;  %v215_v47 = vand.u32 4294901760, %v214_v7  ;;  %v1649_v48 = vpack.c.bf16 %v130_v13, %v127_v8  ;;  %v44_v29 = vld [vmem:[%s2017_s0 + $0xe0] sm:$0xff]  ;;  %v45_v55 = vld [vmem:[%s2017_s0 + $0xe8] sm:$0xff] }
  0x1b   :  { %1259 = vmatprep.subr.bf16.mxu1 %v1258_v19  ;;  %v1651_v51 = vsub.f32 %v42_v56, %v127_v8  ;;  %v333_v52 = vsub.f32 %v1566_v63, %v2021_v11  ;;  %v340_v59 = vsub.f32 %v1587_v12, %v2020_v23  ;;  %v82_v2 = vand.u32 4294901760, %v27_v18  ;;  %v28_v8 = vld [vmem:[%s2017_s0 + $0x60] sm:$0xff] }
  0x1c   :  { %2070 = vst [vmem:[#allocation5_spill] sm:$0xff] %v1649_v48  ;;  %v1260_v3 = vpack.c.bf16 %v215_v47, %v208_v37  ;;  %1239 = vmatprep.subr.bf16.mxu0 %v1649_v48  ;;  %v1666_v56 = vsub.f32 %v43_v57, %v130_v13  ;;  %v2024_v6 = vand.u32 4294901760, %v1591_v17  ;;  %v2027_v7 = vand.u32 4294901760, %v1605_v42 }
  0x1d   :  { %v334_v19 = vand.u32 4294901760, %v333_v52  ;;  %v341_v23 = vand.u32 4294901760, %v340_v59  ;;  %v1673_v11 = vpack.c.bf16 %v82_v2, %v79_v24  ;;  %v1675_v0 = vsub.f32 %v26_v1, %v79_v24  ;;  %v29_v52 = vld [vmem:[%s2017_s0 + $0x68] sm:$0xff] }
  0x1e   :  { %1261 = vmatpush3.bf16.msra.mxu1 %v1260_v3  ;;  %v221_v57 = vsub.f32 %v1591_v17, %v2024_v6  ;;  %v228_v13 = vsub.f32 %v1605_v42, %v2027_v7  ;;  %v133_v37 = vand.u32 4294901760, %v44_v29  ;;  %v136_v47 = vand.u32 4294901760, %v45_v55 }
  0x1f   :  { %2071 = vst [vmem:[#allocation6_spill] sm:$0xff] %v1673_v11  ;;  %v1262_v59 = vpack.c.bf16 %v341_v23, %v334_v19  ;;  %1241 = vmatpush3.bf16.msra.mxu0 %v1673_v11  ;;  %v2030_v1 = vand.u32 4294901760, %v1609_v50  ;;  %v2029_v24 = vand.u32 4294901760, %v1624_v60  ;;  %v85_v3 = vand.u32 4294901760, %v28_v8 }
  0x20   :  { %v1689_v61 = vsub.f32 %v27_v18, %v82_v2  ;;  %v222_v6 = vand.u32 4294901760, %v221_v57  ;;  %v229_v34 = vand.u32 4294901760, %v228_v13  ;;  %v1691_v33 = vpack.c.bf16 %v136_v47, %v133_v37  ;;  %v46_v18 = vld [vmem:[%s2017_s0 + $0xf0] sm:$0xff]  ;;  %v47_v2 = vld [vmem:[%s2017_s0 + $0xf8] sm:$0xff] }
  0x21   :  { %1263 = vmatprep.subr.bf16.mxu1 %v1262_v59  ;;  %v1693_v7 = vsub.f32 %v44_v29, %v133_v37  ;;  %v347_v23 = vsub.f32 %v1609_v50, %v2030_v1  ;;  %v354_v19 = vsub.f32 %v1624_v60, %v2029_v24  ;;  %v88_v10 = vand.u32 4294901760, %v29_v52  ;;  %v30_v59 = vld [vmem:[%s2017_s0 + $0x70] sm:$0xff] }
  0x22   :  { %2072 = vst [vmem:[#allocation7_spill] sm:$0xff] %v1691_v33  ;;  %v1264_v57 = vpack.c.bf16 %v229_v34, %v222_v6  ;;  %1243 = vmatprep.subr.bf16.mxu0 %v1691_v33  ;;  %v1708_v29 = vsub.f32 %v45_v55, %v136_v47  ;;  %v2034_v13 = vand.u32 4294901760, %v1633_v5  ;;  %v2037_v37 = vand.u32 4294901760, %v1647_v30 }
  0x23   :  { %v348_v24 = vand.u32 4294901760, %v347_v23  ;;  %v355_v1 = vand.u32 4294901760, %v354_v19  ;;  %v1715_v9 = vpack.c.bf16 %v88_v10, %v85_v3  ;;  %v1717_v54 = vsub.f32 %v28_v8, %v85_v3  ;;  %v31_v23 = vld [vmem:[%s2017_s0 + $0x78] sm:$0xff] }
  0x24   :  { %1265 = vmatpush3.bf16.msra.mxu1 %v1264_v57  ;;  %v235_v34 = vsub.f32 %v1633_v5, %v2034_v13  ;;  %v242_v55 = vsub.f32 %v1647_v30, %v2037_v37  ;;  %v139_v6 = vand.u32 4294901760, %v46_v18  ;;  %v142_v47 = vand.u32 4294901760, %v47_v2 }
  0x25   :  { %2073 = vst [vmem:[#allocation8_spill] sm:$0xff] %v1715_v9  ;;  %v1266_v19 = vpack.c.bf16 %v355_v1, %v348_v24  ;;  %1245 = vmatpush3.bf16.msra.mxu0 %v1715_v9  ;;  %v2040_v8 = vand.u32 4294901760, %v1651_v51  ;;  %v2039_v3 = vand.u32 4294901760, %v1666_v56  ;;  %v91_v57 = vand.u32 4294901760, %v30_v59 }
  0x26   :  { %v1731_v53 = vsub.f32 %v29_v52, %v88_v10  ;;  %v236_v13 = vand.u32 4294901760, %v235_v34  ;;  %v243_v36 = vand.u32 4294901760, %v242_v55  ;;  %v1733_v35 = vpack.c.bf16 %v142_v47, %v139_v6  ;;  %v13_v10 = vld [vmem:[%s2018_s1 + $0x8] sm:$0xff] }
  0x27   :  { %1267 = vmatprep.subr.bf16.mxu1 %v1266_v19  ;;  %v1735_v37 = vsub.f32 %v46_v18, %v139_v6  ;;  %v361_v1 = vsub.f32 %v1651_v51, %v2040_v8  ;;  %v368_v24 = vsub.f32 %v1666_v56, %v2039_v3  ;;  %v94_v44 = vand.u32 4294901760, %v31_v23  ;;  %v12_v6 = vld [vmem:[%s2018_s1] sm:$0xff] }
  0x28   :  { %2074 = vst [vmem:[#allocation9_spill] sm:$0xff] %v1733_v35  ;;  %v1268_v52 = vpack.c.bf16 %v243_v36, %v236_v13  ;;  %1247 = vmatprep.subr.bf16.mxu0 %v1733_v35  ;;  %v1747_v34 = vsub.f32 %v47_v2, %v142_v47  ;;  %v2044_v18 = vand.u32 4294901760, %v1675_v0  ;;  %v2045_v55 = vand.u32 4294901760, %v1689_v61 }
  0x29   :  { %v362_v19 = vand.u32 4294901760, %v361_v1  ;;  %v369_v3 = vand.u32 4294901760, %v368_v24  ;;  %v1754_v8 = vpack.c.bf16 %v94_v44, %v91_v57  ;;  %v1756_v41 = vsub.f32 %v30_v59, %v91_v57 }
  0x2a   :  { %1269 = vmatpush3.bf16.msra.mxu1 %v1268_v52  ;;  %v249_v36 = vsub.f32 %v1675_v0, %v2044_v18  ;;  %v256_v2 = vsub.f32 %v1689_v61, %v2045_v55  ;;  %v1764_v13 = vand.u32 4294901760, %v13_v10  ;;  %v2048_v47 = vand.u32 4294901760, %v1693_v7 }
  0x2b   :  { %2075 = vst [vmem:[#allocation10_spill] sm:$0xff] %v1754_v8  ;;  %v1270_v35 = vpack.c.bf16 %v369_v3, %v362_v19  ;;  %1249 = vmatpush3.bf16.msra.mxu0 %v1754_v8  ;;  %v2054_v1 = vand.u32 4294901760, %v1708_v29  ;;  %v1282_v59 = vpack.c.bf16 %v1515_v32, %v1513_v31  ;;  %v1771_v57 = vand.u32 4294901760, %v12_v6 }
  0x2c   :  { %2076 = vst [vmem:[#allocation11_spill] sm:$0xff] %v1764_v13  ;;  %v250_v24 = vand.u32 4294901760, %v249_v36  ;;  %v257_v52 = vand.u32 4294901760, %v256_v2  ;;  %v1774_v18 = vsub.f32 %v13_v10, %v1764_v13  ;;  %v375_v55 = vsub.f32 %v1693_v7, %v2048_v47  ;;  %400 = vmatprep.mubr.f32.mxu1 %v1764_v13 }
  0x2d   :  { %1271 = vmatprep.subr.bf16.mxu1 %v1270_v35  ;;  %v382_v3 = vsub.f32 %v1708_v29, %v2054_v1  ;;  %1283 = vmatprep.subr.bf16.mxu0 %v1282_v59  ;;  %v1784_v19 = vsub.f32 %v12_v6, %v1771_v57  ;;  %v2053_v36 = vand.u32 4294901760, %v1717_v54  ;;  %v2055_v10 = vand.u32 4294901760, %v1731_v53 }
  0x2e   :  { %v1788_v2 = vsub.f32 %v31_v23, %v94_v44  ;;  %v1272_v8 = vpack.c.bf16 %v257_v52, %v250_v24  ;;  %v2056_v47 = vand.u32 4294901760, %v1774_v18  ;;  %v376_v9 = vand.u32 4294901760, %v375_v55 }
  0x2f   :  { %2077 = vst [vmem:[#allocation12_spill] sm:$0xff] %v1784_v19  ;;  %v383_v13 = vand.u32 4294901760, %v382_v3  ;;  %v2059_v35 = vand.u32 4294901760, %v1784_v19  ;;  %v263_v59 = vsub.f32 %v1717_v54, %v2053_v36  ;;  %v270_v6 = vsub.f32 %v1731_v53, %v2055_v10 }
  0x30   :  { %1273 = vmatpush3.bf16.msra.mxu1 %v1272_v8  ;;  %v147_v44 = vsub.f32 %v1774_v18, %v2056_v47  ;;  %v1284_v23 = vpack.c.bf16 %v1493_v21, %v1483_v15  ;;  %v2060_v55 = vand.u32 4294901760, %v1735_v37  ;;  %v2061_v24 = vand.u32 4294901760, %v1747_v34 }
  0x31   :  { %v1274_v52 = vpack.c.bf16 %v383_v13, %v376_v9  ;;  %v153_v3 = vsub.f32 %v1784_v19, %v2059_v35  ;;  %v264_v36 = vand.u32 4294901760, %v263_v59  ;;  %v271_v1 = vand.u32 4294901760, %v270_v6  ;;  %v15_v9 = vld [vmem:[%s2018_s1 + $0x18] sm:$0xff] }
  0x32   :  { %v148_v10 = vand.u32 4294901760, %v147_v44  ;;  %v389_v8 = vsub.f32 %v1735_v37, %v2060_v55  ;;  %v396_v47 = vsub.f32 %v1747_v34, %v2061_v24  ;;  %v2063_v33 = vand.u32 4294901760, %v1756_v41 }
  0x33   :  { %1275 = vmatprep.subr.bf16.mxu1 %v1274_v52  ;;  %v154_v13 = vand.u32 4294901760, %v153_v3  ;;  %v1276_v35 = vpack.c.bf16 %v271_v1, %v264_v36  ;;  %v1286_v59 = vpack.c.bf16 %v1506_v26, %v1504_v25  ;;  %v2062_v6 = vand.u32 4294901760, %v1788_v2  ;;  %v14_v1 = vld [vmem:[%s2018_s1 + $0x10] sm:$0xff]  ;;  %s1439_s1 = smov [#allocation2]  }
  0x34   :  { %149 = vmatprep.mubr.f32.mxu0 %v148_v10  ;;  %v390_v44 = vand.u32 4294901760, %v389_v8  ;;  %v397_v55 = vand.u32 4294901760, %v396_v47  ;;  %v277_v24 = vsub.f32 %v1756_v41, %v2063_v33  ;;  %v1827_v3 = vand.u32 4294901760, %v15_v9  ;;  %s979_s24 = sshll.u32 %s1439_s1, 4  ;;  %s980_s24 = int_to_ptr.vmem [resolvable:$true] %s979_s24 }
  0x35   :  { %155 = vmatmul.mubr.f32.vlgmr.msra.gmra.mrb[0].mxu0 %v154_v13  ;;  %1277 = vmatpush3.bf16.msra.mxu1 %v1276_v35  ;;  %v284_v52 = vsub.f32 %v1788_v2, %v2062_v6  ;;  %v1288_v47 = vpack.c.bf16 %v1523_v38, %v1510_v28  ;;  %v1290_v35 = vpack.c.bf16 %v1533_v43, %v1527_v40  ;;  %v1839_v6 = vand.u32 4294901760, %v14_v1  ;;  %s1414_s25 = scalar_lea.vmem %s980_s24, 512  ;;  %p1419_p1 = scmp.lt.s32.totalorder %s980_s24, %s980_s24 }
  0x36   :  { %1285 = vmatpush3.bf16.msra.mxu0 %v1284_v23  ;;  %v1278_v36 = vpack.c.bf16 %v397_v55, %v390_v44  ;;  %v278_v10 = vand.u32 4294901760, %v277_v24  ;;  %v1837_v13 = vsub.f32 %v15_v9, %v1827_v3  ;;  %v1292_v23 = vpack.c.bf16 %v1562_v58, %v1538_v46  ;;  %p1415_p0 = scmp.ne.s32.totalorder %s980_s24, %s1414_s25  ;;  %p1420_p2 = scmp.lt.s32.totalorder %s1414_s25, %s1414_s25 }
  0x37   :  { %1287 = vmatprep.subr.bf16.mxu0 %v1286_v59  ;;  %v285_v8 = vand.u32 4294901760, %v284_v52  ;;  %v1294_v55 = vpack.c.bf16 %v1587_v12, %v1566_v63  ;;  %v2078_v24 = vand.u32 4294901760, %v1513_v31  ;;  %v2079_v59 = vand.u32 4294901760, %v1515_v32 }
  0x38   :  { %1279 = vmatprep.subr.bf16.mxu1 %v1278_v36  ;;  %v161_v52 = vand.u32 4294901760, %v1837_v13  ;;  %v1851_v9 = vsub.f32 %v14_v1, %v1839_v6  ;;  %v2080_v36 = vand.u32 4294901760, %v1483_v15  ;;  %v2082_v19 = vand.u32 4294901760, %v1504_v25  ;;  %p1421_p3 = por %p1420_p2, %p1419_p1 }
  0x39   :  { %v1280_v33 = vpack.c.bf16 %v285_v8, %v278_v10  ;;  %v1346_v44 = vpack.c.bf16 %v2079_v59, %v2078_v24  ;;  %v2081_v10 = vand.u32 4294901760, %v1493_v21  ;;  %v2083_v11 = vand.u32 4294901760, %v1506_v26 }
  0x3a   :  { %1289 = vmatpush3.bf16.msra.mxu0 %v1288_v47  ;;  %v2084_v31 = vand.u32 4294901760, %v1510_v28  ;;  %v2085_v32 = vand.u32 4294901760, %v1523_v38  ;;  %v2086_v1 = vand.u32 4294901760, %v1527_v40  ;;  %v2087_v24 = vand.u32 4294901760, %v1533_v43  ;;  %p1422_p4 = pnand %p1421_p3, %p1415_p0 }
  0x3b   :  { %v1348_v8 = vpack.c.bf16 %v2081_v10, %v2080_v36  ;;  %v1350_v48 = vpack.c.bf16 %v2083_v11, %v2082_v19  ;;  %1281 = vmatpush3.bf16.msra.mxu1 %v1280_v33  ;;  %1291 = vmatprep.subr.bf16.mxu0 %v1290_v35  ;;  %v2088_v21 = vand.u32 4294901760, %v1538_v46  ;;  %v2089_v59 = vand.u32 4294901760, %v1562_v58 }
  0x3c   :  { %v1352_v47 = vpack.c.bf16 %v2085_v32, %v2084_v31  ;;  %v1354_v15 = vpack.c.bf16 %v2087_v24, %v2086_v1  ;;  %1315 = vmatprep.subr.bf16.mxu1 %v1481_v14  ;;  %v162_v26 = vsub.f32 %v1837_v13, %v161_v52  ;;  %v167_v28 = vand.u32 4294901760, %v1851_v9 }
  0x3d   :  { %v1873_v25 = vpack.c.bf16 %v2089_v59, %v2088_v21  ;;  %v2090_v38 = vand.u32 4294901760, %v1566_v63  ;;  %v2091_v40 = vand.u32 4294901760, %v1587_v12  ;;  %v2092_v33 = vand.u32 4294901760, %v1591_v17  ;;  %v2100_v21 = vld [vmem:[#allocation6_spill] sm:$0xff]  ;;  %v2101_v59 = vld [vmem:[#allocation7_spill] sm:$0xff] }
  0x3e   :  { %v2093_v46 = vand.u32 4294901760, %v1605_v42  ;;  %v2094_v11 = vand.u32 4294901760, %v1609_v50  ;;  %v2095_v19 = vand.u32 4294901760, %v1624_v60  ;;  %v2096_v36 = vand.u32 4294901760, %v1633_v5  ;;  %402 = vmatmul.mubr.f32.vlgmr.msra.gmra.mrb[0].mxu1 %v1771_v57  ;;  %1293 = vmatpush3.bf16.msra.mxu0 %v1292_v23 }
  0x3f   :  { %v1358_v43 = vpack.c.bf16 %v2091_v40, %v2090_v38  ;;  %v2097_v10 = vand.u32 4294901760, %v1647_v30  ;;  %v1296_v12 = vpack.c.bf16 %v1605_v42, %v1591_v17  ;;  %v163_v31 = vand.u32 4294901760, %v162_v26  ;;  %1317 = vmatpush3.bf16.msra.mxu1 %v1491_v20  ;;  %1295 = vmatprep.subr.bf16.mxu0 %v1294_v55  ;;  %v2099_v55 = vld [vmem:[#allocation5_spill] sm:$0xff]  ;;  %v2102_v26 = vld [vmem:[#allocation12_spill] sm:$0xff] }
  0x40   :  { %v1888_v58 = vpack.c.bf16 %v2093_v46, %v2092_v33  ;;  %v1894_v35 = vpack.c.bf16 %v2095_v19, %v2094_v11  ;;  %v168_v32 = vsub.f32 %v1851_v9, %v167_v28  ;;  %v1298_v1 = vpack.c.bf16 %v1624_v60, %v1609_v50  ;;  %1319 = vmatprep.subr.bf16.mxu1 %v1495_v22  ;;  %v2103_v38 = vld [vmem:[#allocation8_spill] sm:$0xff]  ;;  %v2104_v40 = vld [vmem:[#allocation9_spill] sm:$0xff]  ;;  %v2105_v33 = vld [vmem:[#allocation11_spill] sm:$0xff] }
  0x41   :  { %v1900_v63 = vpack.c.bf16 %v2097_v10, %v2096_v36  ;;  %164 = vmatprep.mubr.f32.mxu0 %v163_v31  ;;  %407 = vmatprep.mubr.f32.mxu1 %v1827_v3  ;;  %v1300_v17 = vpack.c.bf16 %v1647_v30, %v1633_v5  ;;  %v1302_v42 = vpack.c.bf16 %v1666_v56, %v1651_v51  ;;  %v2098_v50 = vand.u32 4294901760, %v1774_v18  ;;  %v2106_v46 = vld [vmem:[#allocation10_spill] sm:$0xff] }
  0x42   :  { %v169_v24 = vand.u32 4294901760, %v168_v32  ;;  %1297 = vmatpush3.bf16.msra.mxu0 %v1296_v12  ;;  %409 = vmatmul.mubr.f32.gmra.mrb[2].mxu1 %v1839_v6  ;;  %v1304_v60 = vpack.c.bf16 %v1689_v61, %v1675_v0  ;;  %v1306_v5 = vpack.c.bf16 %v1708_v29, %v1693_v7  ;;  %v1308_v30 = vpack.c.bf16 %v1731_v53, %v1717_v54 }
  0x43   :  { %1321 = vmatpush3.bf16.msra.mxu1 %v1508_v27  ;;  %1299 = vmatprep.subr.bf16.mxu0 %v1298_v1  ;;  %v1312_v23 = vpack.c.bf16 %v1788_v2, %v1756_v41  ;;  %vm966_vm0 = vcmask 519168   ;;  %vm971_vm1 = vcmask 523264  }
  0x44   :  { %1323 = vmatprep.subr.bf16.mxu1 %v1525_v39  ;;  %170 = vmatmul.mubr.f32.gmra.mrb[2].mxu0 %v169_v24 }
  0x45   :  { %544 = vmatprep.mubr.f32.mxu0 %v1774_v18  ;;  %660 = vmatprep.mubr.f32.mxu1 %v2098_v50  ;;  %v1310_v18 = vpack.c.bf16 %v1747_v34, %v1735_v37 }
  0x46   :  { %1301 = vmatpush3.bf16.msra.mxu0 %v1300_v17 }
  0x47   :  { %1325 = vmatpush3.bf16.msra.mxu1 %v1536_v45  ;;  %1303 = vmatprep.subr.bf16.mxu0 %v1302_v42 }
  0x48   :  { %1327 = vmatprep.subr.bf16.mxu1 %v1564_v62 }
  0x4a   :  { %1305 = vmatpush3.bf16.msra.mxu0 %v1304_v60 }
  0x4b   :  { %1329 = vmatpush3.bf16.msra.mxu1 %v1589_v16  ;;  %1307 = vmatprep.subr.bf16.mxu0 %v1306_v5 }
  0x4c   :  { %1331 = vmatprep.subr.bf16.mxu1 %v1607_v49 }
  0x4e   :  { %1309 = vmatpush3.bf16.msra.mxu0 %v1308_v30 }
  0x4f   :  { %1333 = vmatpush3.bf16.msra.mxu1 %v1631_v4  ;;  %1311 = vmatprep.subr.bf16.mxu0 %v1310_v18 }
  0x50   :  { %1335 = vmatprep.subr.bf16.mxu1 %v2099_v55 }
  0x52   :  { %1313 = vmatpush3.bf16.msra.mxu0 %v1312_v23 }
  0x53   :  { %1337 = vmatpush3.bf16.msra.mxu1 %v2100_v21  ;;  %1347 = vmatprep.subr.bf16.mxu0 %v1346_v44  ;;  %v2107_v44 = vand.u32 4294901760, %v2102_v26 }
  0x54   :  { %1339 = vmatprep.subr.bf16.mxu1 %v2101_v59 }
  0x55   :  { %547 = vmatmul.mubr.f32.vlgmr.msra.gmra.mrb[4].mxu0 %v2102_v26 }
  0x56   :  { %1349 = vmatpush3.bf16.msra.mxu0 %v1348_v8  ;;  %553 = vmatprep.mubr.f32.mxu0 %v1837_v13  ;;  %v2111_v13 = vand.u32 4294901760, %v1689_v61  ;;  %v2116_v61 = vand.u32 4294901760, %v1735_v37 }
  0x57   :  { %1341 = vmatpush3.bf16.msra.mxu1 %v2103_v38  ;;  %1351 = vmatprep.subr.bf16.mxu0 %v1350_v48  ;;  %v2109_v48 = vand.u32 4294901760, %v1666_v56 }
  0x58   :  { %1343 = vmatprep.subr.bf16.mxu1 %v2104_v40 }
  0x59   :  { %556 = vmatmul.mubr.f32.gmra.mrb[6].mxu0 %v1851_v9  ;;  %v2115_v9 = vand.u32 4294901760, %v1731_v53 }
  0x5a   :  { %1353 = vmatpush3.bf16.msra.mxu0 %v1352_v47  ;;  %841 = vmatprep.mubr.f32.mxu0 %v2105_v33 }
  0x5b   :  { %1345 = vmatpush3.bf16.msra.mxu1 %v2106_v46  ;;  %1355 = vmatprep.subr.bf16.mxu0 %v1354_v15 }
  0x5c   :  { %1379 = vmatprep.subr.bf16.mxu1 %v1481_v14  ;;  %v2108_v14 = vand.u32 4294901760, %v1651_v51  ;;  %v2113_v51 = vand.u32 4294901760, %v1708_v29 }
  0x5e   :  { %664 = vmatmul.mubr.f32.vlgmr.msra.gmra.mrb[4].mxu1 %v2107_v44  ;;  %1357 = vmatpush3.bf16.msra.mxu0 %v1873_v25 }
  0x5f   :  { %1381 = vmatpush3.bf16.msra.mxu1 %v1491_v20  ;;  %671 = vmatprep.mubr.f32.mxu1 %v161_v52  ;;  %v1366_v20 = vpack.c.bf16 %v2109_v48, %v2108_v14 }
  0x60   :  { %1359 = vmatprep.subr.bf16.mxu0 %v1358_v43  ;;  %1383 = vmatprep.subr.bf16.mxu1 %v1495_v22  ;;  %v2110_v22 = vand.u32 4294901760, %v1675_v0 }
  0x62   :  { %675 = vmatmul.mubr.f32.gmra.mrb[6].mxu1 %v167_v28  ;;  %1361 = vmatpush3.bf16.msra.mxu0 %v1888_v58  ;;  %v1368_v52 = vpack.c.bf16 %v2111_v13, %v2110_v22 }
  0x63   :  { %1385 = vmatpush3.bf16.msra.mxu1 %v1508_v27  ;;  %1363 = vmatprep.subr.bf16.mxu0 %v1894_v35  ;;  %v2112_v27 = vand.u32 4294901760, %v1693_v7  ;;  %v2118_v7 = vand.u32 4294901760, %v1756_v41  ;;  %v1438_v41 = vmov 0.0  }
  0x64   :  { %1387 = vmatprep.subr.bf16.mxu1 %v1525_v39  ;;  %952 = vmatprep.mubr.f32.mxu1 %v2105_v33  ;;  %v2114_v39 = vand.u32 4294901760, %v1717_v54  ;;  %967 = vst.msk [vmem:[#allocation2] sm:$0xf] %vm966_vm0, %v1438_v41  ;;  %968 = vst.msk [vmem:[#allocation2 + $0x10] sm:$0xf] %vm966_vm0, %v1438_v41 }
  0x65   :  { %v1370_v56 = vpack.c.bf16 %v2113_v51, %v2112_v27  ;;  %969 = vst.msk [vmem:[#allocation2 + $0xc] sm:$0xf] %vm966_vm0, %v1438_v41  ;;  %970 = vst.msk [vmem:[#allocation2 + $0x1c] sm:$0xf] %vm966_vm0, %v1438_v41 }
  0x66   :  { %1365 = vmatpush3.bf16.msra.mxu0 %v1900_v63  ;;  %v1372_v8 = vpack.c.bf16 %v2115_v9, %v2114_v39 }
  0x67   :  { %1389 = vmatpush3.bf16.msra.mxu1 %v1536_v45  ;;  %1367 = vmatprep.subr.bf16.mxu0 %v1366_v20  ;;  %v2117_v45 = vand.u32 4294901760, %v1747_v34 }
  0x68   :  { %1391 = vmatprep.subr.bf16.mxu1 %v1564_v62  ;;  %v2119_v62 = vand.u32 4294901760, %v1788_v2 }
  0x69   :  { %v1374_v0 = vpack.c.bf16 %v2117_v45, %v2116_v61 }
  0x6a   :  { %1369 = vmatpush3.bf16.msra.mxu0 %v1368_v52  ;;  %v1376_v29 = vpack.c.bf16 %v2119_v62, %v2118_v7 }
  0x6b   :  { %1393 = vmatpush3.bf16.msra.mxu1 %v1589_v16  ;;  %1371 = vmatprep.subr.bf16.mxu0 %v1370_v56 }
  0x6c   :  { %1395 = vmatprep.subr.bf16.mxu1 %v1607_v49 }
  0x6e   :  { %1373 = vmatpush3.bf16.msra.mxu0 %v1372_v8 }
  0x6f   :  { %1397 = vmatpush3.bf16.msra.mxu1 %v1631_v4  ;;  %1375 = vmatprep.subr.bf16.mxu0 %v1374_v0 }
  0x70   :  { %1399 = vmatprep.subr.bf16.mxu1 %v2099_v55 }
  0x72   :  { %1377 = vmatpush3.bf16.msra.mxu0 %v1376_v29 }
  0x73   :  { %1401 = vmatpush3.bf16.msra.mxu1 %v2100_v21 }
  0x74   :  { %1403 = vmatprep.subr.bf16.mxu1 %v2101_v59 }
  0x75   :  { %843 = vmatmul.mubr.f32.vlgmr.msra.gmra.mrb[8].mxu0 %v1771_v57 }
  0x76   :  { %848 = vmatprep.mubr.f32.mxu0 %v1827_v3 }
  0x77   :  { %1405 = vmatpush3.bf16.msra.mxu1 %v2103_v38 }
  0x78   :  { %1407 = vmatprep.subr.bf16.mxu1 %v2104_v40 }
  0x79   :  { %850 = vmatmul.mubr.f32.gmra.mrb[10].mxu0 %v1839_v6 }
  0x7b   :  { %1409 = vmatpush3.bf16.msra.mxu1 %v2106_v46 }
  0x7e   :  { %954 = vmatmul.mubr.f32.vlgmr.msra.gmra.mrb[8].mxu1 %v1771_v57 }
  0x7f   :  { %959 = vmatprep.mubr.f32.mxu1 %v1827_v3 }
  0x82   :  { %961 = vmatmul.mubr.f32.gmra.mrb[10].mxu1 %v1839_v6 }
 0x108   :  { %v1022_v53 = vpop.f32.mrb[0].mxu0 }
 0x109   :  { %v1023_v54 = vpop.f32.mrb[1].mxu0 }
 0x10a   :  { %v1024_v16 = vadd.f32 %v1023_v54, %v1022_v53 }
 0x111   :  { %v1060_v49 = vpop.f32.mrb[0].mxu1 }
 0x112   :  { %v1061_v4 = vpop.f32.mrb[1].mxu1 }
 0x113   :  { %v1062_v37 = vadd.f32 %v1061_v4, %v1060_v49 }
 0x115   :  { %v404_v34 = vadd.f32 %v1062_v37, %v1024_v16  ;;  %v1063_v2 = vpop.f32.mrb[2].mxu1 }
 0x116   :  { %v1064_v47 = vpop.f32.mrb[3].mxu1 }
 0x117   :  { %v1025_v57 = vpop.f32.mrb[2].mxu0  ;;  %v1065_v15 = vadd.f32 %v1064_v47, %v1063_v2 }
 0x118   :  { %v1026_v3 = vpop.f32.mrb[3].mxu0 }
 0x119   :  { %v1027_v25 = vadd.f32 %v1026_v3, %v1025_v57 }
 0x11b   :  { %v411_v6 = vadd.f32 %v1065_v15, %v1027_v25 }
 0x128   :  { %v1098_v28 = vpop.f32.mrb[4].mxu0 }
 0x129   :  { %v1099_v43 = vpop.f32.mrb[5].mxu0 }
 0x12a   :  { %v1100_v58 = vadd.f32 %v1099_v43, %v1098_v28 }
 0x12c   :  { %v549_v11 = vadd.f32 %v1100_v58, %v404_v34  ;;  %v1101_v19 = vpop.f32.mrb[6].mxu0 }
 0x12d   :  { %v1102_v35 = vpop.f32.mrb[7].mxu0 }
 0x12e   :  { %v1103_v36 = vadd.f32 %v1102_v35, %v1101_v19 }
 0x130   :  { %v558_v10 = vadd.f32 %v1103_v36, %v411_v6 }
 0x131   :  { %v1136_v63 = vpop.f32.mrb[4].mxu1 }
 0x132   :  { %v1137_v12 = vpop.f32.mrb[5].mxu1 }
 0x133   :  { %v1138_v31 = vadd.f32 %v1137_v12, %v1136_v63 }
 0x135   :  { %v666_v32 = vadd.f32 %v1138_v31, %v549_v11  ;;  %v1139_v1 = vpop.f32.mrb[6].mxu1 }
 0x136   :  { %v1140_v24 = vpop.f32.mrb[7].mxu1 }
 0x137   :  { %v1141_v17 = vadd.f32 %v1140_v24, %v1139_v1 }
 0x139   :  { %v677_v42 = vadd.f32 %v1141_v17, %v558_v10 }
 0x148   :  { %v1174_v50 = vpop.f32.mrb[8].mxu0 }
 0x149   :  { %v1175_v60 = vpop.f32.mrb[9].mxu0 }
 0x14a   :  { %v1176_v5 = vadd.f32 %v1175_v60, %v1174_v50 }
 0x14c   :  { %v845_v30 = vadd.f32 %v1176_v5, %v666_v32  ;;  %v1177_v18 = vpop.f32.mrb[10].mxu0 }
 0x14d   :  { %v1178_v23 = vpop.f32.mrb[11].mxu0 }
 0x14e   :  { %v1179_v55 = vadd.f32 %v1178_v23, %v1177_v18 }
 0x150   :  { %v852_v21 = vadd.f32 %v1179_v55, %v677_v42 }
 0x151   :  { %v1212_v59 = vpop.f32.mrb[8].mxu1 }
 0x152   :  { %v1213_v26 = vpop.f32.mrb[9].mxu1 }
 0x153   :  { %v1214_v38 = vadd.f32 %v1213_v26, %v1212_v59 }
 0x155   :  { %v956_v40 = vadd.f32 %v1214_v38, %v845_v30  ;;  %v1215_v33 = vpop.f32.mrb[10].mxu1 }
 0x156   :  { %v1216_v46 = vpop.f32.mrb[11].mxu1 }
 0x157   :  { %972 = vst.msk [vmem:[#allocation2 + $0x4] sm:$0xff] %vm971_vm1, %v956_v40  ;;  %v1217_v44 = vadd.f32 %v1216_v46, %v1215_v33 }
 0x159   :  { %v963_v14 = vadd.f32 %v1217_v44, %v852_v21 }
 0x15b   :  { %973 = vst.msk [vmem:[#allocation2 + $0x14] sm:$0xff] %vm971_vm1, %v963_v14 }
 0x15c   :  { %1425 = shalt.err (!%p1422_p4)
}
 0x15d   :  { %s1426_s28 = scalar_lea.hbm %s2019_s2, 512 }
 0x15e   :  { %p1427_p5 = scmp.ne.s32.totalorder %s2019_s2, %s1426_s28  ;;  %p1430_p6 = scmp.lt.u32.totalorder %s1426_s28, %s2019_s2 }
 0x160   :  { %p1432_p7 = pnand %p1430_p6, %p1427_p5 }
 0x162   :  { %1435 = shalt.err (!%p1432_p7)
}
 0x163   :  { %s1440_s5 = smov 128   ;;  %s1441_s6 = smov 8  }
 0x164   :  { %985 = dma.vmem_to_hbm [thread:$0]  %s980_s24, 512, %s2019_s2, [#allocation3], %s1440_s5, %s1440_s5, %s1441_s6  }
 0x165   :  { %1436 = dma.done.wait [#allocation3], 512  }
 0x166   :  { %1437 = vsyncadd [#allocation3], 4294966784 }
 0x167   :  { %989 = vsyncpa [#allocation3], 1 }

</bundles_post_ra>
